<compile_context>
chip_gen: v7x
topology: tpu7x:2x2x1
jax: 0.10.0
libtpu: 0.0.40
codegen_flags: <defaults>
</compile_context>

<pallas_src>
import math
from functools import partial

import jax
import jax.numpy as jnp
from jax.experimental import pallas as pl
from jax.experimental.pallas import tpu as pltpu


def _round_up(x, m):
    return ((x + m - 1) // m) * m


def _mlp_kernel(x_ref, w1_ref, b1_ref, w2_ref, b2_ref, w3_ref, b3_ref, o_ref):
    # linear1 + relu  (bf16 operands -> f32 accumulate; elementwise stays f32)
    h1 = jnp.dot(x_ref[...], w1_ref[...], preferred_element_type=jnp.float32)
    h1 = jnp.maximum(h1 + b1_ref[...], 0.0).astype(jnp.bfloat16)
    # linear2 + relu
    h2 = jnp.dot(h1, w2_ref[...], preferred_element_type=jnp.float32)
    h2 = jnp.maximum(h2 + b2_ref[...], 0.0).astype(jnp.bfloat16)
    # linear3 (logits, no activation); bf16 store halves output writeback
    out = jnp.dot(h2, w3_ref[...], preferred_element_type=jnp.float32)
    o_ref[...] = (out + b3_ref[...]).astype(o_ref.dtype)


def prepare_params(params):
    """One-time prep: transpose PyTorch (out,in) weights to (in,out), zero-pad
    all feature dims to multiples of 128 lanes, cast weights to bf16 (biases
    stay f32). Zero padding is numerically exact through bias-add + ReLU."""
    w1, b1 = params["w1"], params["b1"]          # (half, in), (half,)
    w2, b2 = params["w2"], params["b2"]          # (quarter, half), (quarter,)
    w3, b3 = params["w3"], params["b3"]          # (out, quarter), (out,)
    in_size = w1.shape[1]
    half, quarter, out_size = w1.shape[0], w2.shape[0], w3.shape[0]

    d_pad = _round_up(in_size, 128)
    h1_pad = _round_up(half, 128)
    h2_pad = _round_up(quarter, 128)
    o_pad = _round_up(out_size, 128)

    def prep_w(w, rows_pad, cols_pad):
        wt = w.T.astype(jnp.float32)             # (in, out)
        wt = jnp.pad(wt, ((0, rows_pad - wt.shape[0]), (0, cols_pad - wt.shape[1])))
        return wt.astype(jnp.bfloat16)

    def prep_b(b, cols_pad):
        b2d = b.astype(jnp.float32)[None, :]
        return jnp.pad(b2d, ((0, 0), (0, cols_pad - b2d.shape[1])))

    return {
        "w1": prep_w(w1, d_pad, h1_pad), "b1": prep_b(b1, h1_pad),
        "w2": prep_w(w2, h1_pad, h2_pad), "b2": prep_b(b2, h2_pad),
        "w3": prep_w(w3, h2_pad, o_pad), "b3": prep_b(b3, o_pad),
        "in_size": in_size, "out_size": out_size,
    }


def _select_batch_tile(B, batch_tile):
    """Pick the batch tile (pure Python on static shapes).

    * Cap at ceil(B/2) rounded up to 8 so the batch grid has >= 2 steps
      whenever B > 8 (keeps both v7x TensorCores busy; neutral on v5e/v6e).
    * Among {batch_tile, /2, /4, 8} (capped), minimize padded rows plus a
      small per-grid-step overhead term (~0.35 us/step), so B = k*tile + tiny
      remainder doesn't pad a whole extra tile and tiny tiles don't explode
      the step count.
    """
    cap = _round_up(max(-(-B // 2), 8), 8)
    cands = sorted({min(_round_up(c, 8), cap)
                    for c in (batch_tile, batch_tile // 2, batch_tile // 4, 8)
                    if c >= 8})
    best_tb, best_cost = None, None
    for tb in cands:
        b_pad = _round_up(B, tb)
        steps = b_pad // tb
        cost = b_pad + 64 * steps          # 64-row-equivalent per-step overhead
        if best_cost is None or cost < best_cost or (cost == best_cost and tb > best_tb):
            best_tb, best_cost = tb, cost
    return best_tb


@partial(jax.jit, static_argnames=("out_size", "batch_tile"))
def _mnist_forward(xb, w1, b1, w2, b2, w3, b3, *, out_size, batch_tile):
    B = xb.shape[0]
    d_pad, h1_pad = w1.shape
    h2_pad = w2.shape[1]
    o_pad = w3.shape[1]

    # Flatten (xb.view(B,-1)), cast to bf16 FIRST, then a single pad that
    # covers both the feature-lane pad and the batch pad.
    x2d = xb.reshape(B, -1).astype(jnp.bfloat16)
    in_size = x2d.shape[1]

    tb = _select_batch_tile(B, batch_tile)
    b_pad = _round_up(B, tb)
    x_bf16 = jnp.pad(x2d, ((0, b_pad - B), (0, d_pad - in_size)))

    grid = (b_pad // tb,)
    const = lambda i: (0, 0)          # weights/biases resident across batch tiles

    out_pad = pl.pallas_call(
        _mlp_kernel,
        out_shape=jax.ShapeDtypeStruct((b_pad, o_pad), jnp.bfloat16),
        grid=grid,
        in_specs=[
            pl.BlockSpec((tb, d_pad), lambda i: (i, 0)),      # x batch tile
            pl.BlockSpec((d_pad, h1_pad), const),             # w1
            pl.BlockSpec((1, h1_pad), const),                 # b1
            pl.BlockSpec((h1_pad, h2_pad), const),            # w2
            pl.BlockSpec((1, h2_pad), const),                 # b2
            pl.BlockSpec((h2_pad, o_pad), const),             # w3
            pl.BlockSpec((1, o_pad), const),                  # b3
        ],
        out_specs=pl.BlockSpec((tb, o_pad), lambda i: (i, 0)),
        compiler_params=pltpu.CompilerParams(
            dimension_semantics=("parallel",)),
    )(x_bf16, w1, b1, w2, b2, w3, b3)

    # Slice away batch + lane padding, return f32 logits.
    return out_pad[:B, :out_size].astype(jnp.float32)


def mnist_model_forward(xb, prepared, batch_tile=512):
    """xb: NCHW float batch.  prepared: output of prepare_params().

    Note: at demo-sized configs (in=64 -> all layers pad to 128x128) the
    fixed pallas_call + per-step overhead dwarfs the compute; the kernel
    pays off at real MNIST dims (in=784) with batches of a few hundred+.
    """
    return _mnist_forward(
        xb,
        prepared["w1"], prepared["b1"],
        prepared["w2"], prepared["b2"],
        prepared["w3"], prepared["b3"],
        out_size=prepared["out_size"], batch_tile=batch_tile)


def init_params(key, in_size, out_size):
    """Deterministic init matching nn.Linear shapes (PyTorch (out,in) layout)."""
    half = math.floor(in_size / 2)
    quarter = math.floor(half / 2)
    keys = jax.random.split(key, 6)

    def linear_init(kw, kb, fan_in, fan_out):
        bound = 1.0 / math.sqrt(fan_in)
        w = jax.random.uniform(kw, (fan_out, fan_in), jnp.float32, -bound, bound)
        b = jax.random.uniform(kb, (fan_out,), jnp.float32, -bound, bound)
        return w, b

    w1, b1 = linear_init(keys[0], keys[1], in_size, half)
    w2, b2 = linear_init(keys[2], keys[3], half, quarter)
    w3, b3 = linear_init(keys[4], keys[5], quarter, out_size)
    return {"w1": w1, "b1": b1, "w2": w2, "b2": b2, "w3": w3, "b3": b3}


def _reference_forward_f32(xb, params):
    x = xb.reshape(xb.shape[0], -1)
    h = jnp.maximum(x @ params["w1"].T + params["b1"], 0.0)
    h = jnp.maximum(h @ params["w2"].T + params["b2"], 0.0)
    return h @ params["w3"].T + params["b3"]


if __name__ == "__main__":
    key = jax.random.PRNGKey(0)
    k_x, k_p = jax.random.split(key)

    # Small MNIST-like input: batch=2, channels=1, 8x8 spatial -> in_size=64.
    B, C, H, W = 2, 1, 8, 8
    in_size = C * H * W      # 64
    out_size = 10            # 10 classes

    xb = jax.random.normal(k_x, (B, C, H, W), dtype=jnp.float32)
    params = init_params(k_p, in_size, out_size)
    prepared = prepare_params(params)   # one-time: transpose/pad/cast weights

    out = mnist_model_forward(xb, prepared)
    out = jax.block_until_ready(out)

    ref = _reference_forward_f32(xb, params)
    assert out.shape == (B, out_size)
    # bf16 MXU operands / bf16 activations + logits (f32 accumulate) -> ~1e-2 dev.
    assert jnp.allclose(out, ref, atol=5e-2, rtol=5e-2), (
        f"max abs err {jnp.max(jnp.abs(out - ref))}")

    print("KERNEL_OK")
</pallas_src>

<mosaic_0001>
module attributes {stable_mosaic.version = 11 : i64} {
  func.func @_mlp_kernel(%arg0: i32, %arg1: memref<8x128xbf16, #tpu.memory_space<vmem>>, %arg2: memref<128x128xbf16, #tpu.memory_space<vmem>>, %arg3: memref<1x128xf32, #tpu.memory_space<vmem>>, %arg4: memref<128x128xbf16, #tpu.memory_space<vmem>>, %arg5: memref<1x128xf32, #tpu.memory_space<vmem>>, %arg6: memref<128x128xbf16, #tpu.memory_space<vmem>>, %arg7: memref<1x128xf32, #tpu.memory_space<vmem>>, %arg8: memref<8x128xbf16, #tpu.memory_space<vmem>>) attributes {dimension_semantics = [#tpu.dimension_semantics<parallel>], iteration_bounds = array<i64: 1>, scalar_prefetch = 0 : i64, scratch_operands = 0 : i64, tpu.core_type = #tpu.core_type<tc>, window_params = [{transform_indices = @transform_0, window_bounds = array<i64: 8, 128>}, {pipeline_mode = #tpu.pipeline_mode<synchronous>, transform_indices = @transform_1, window_bounds = array<i64: 128, 128>}, {pipeline_mode = #tpu.pipeline_mode<synchronous>, transform_indices = @transform_2, window_bounds = array<i64: 1, 128>}, {pipeline_mode = #tpu.pipeline_mode<synchronous>, transform_indices = @transform_3, window_bounds = array<i64: 128, 128>}, {pipeline_mode = #tpu.pipeline_mode<synchronous>, transform_indices = @transform_4, window_bounds = array<i64: 1, 128>}, {pipeline_mode = #tpu.pipeline_mode<synchronous>, transform_indices = @transform_5, window_bounds = array<i64: 128, 128>}, {pipeline_mode = #tpu.pipeline_mode<synchronous>, transform_indices = @transform_6, window_bounds = array<i64: 1, 128>}, {transform_indices = @transform_7, window_bounds = array<i64: 8, 128>}]} {
    %c0 = arith.constant 0 : index
    %c0_0 = arith.constant 0 : index
    %0 = vector.load %arg1[%c0, %c0_0] : memref<8x128xbf16, #tpu.memory_space<vmem>>, vector<8x128xbf16>
    %c0_1 = arith.constant 0 : index
    %c0_2 = arith.constant 0 : index
    %1 = vector.load %arg2[%c0_1, %c0_2] : memref<128x128xbf16, #tpu.memory_space<vmem>>, vector<128x128xbf16>
    %cst = arith.constant dense<0.000000e+00> : vector<8x128xf32>
    %2 = tpu.matmul %0, %1, %cst {dimension_numbers = #tpu.dot_dimension_numbers<[1], [0], [0], [1], [0, 0, 1, 1], [], []>} : vector<8x128xbf16>, vector<128x128xbf16>, vector<8x128xf32> -> vector<8x128xf32>
    %c0_3 = arith.constant 0 : index
    %c0_4 = arith.constant 0 : index
    %3 = vector.load %arg3[%c0_3, %c0_4] : memref<1x128xf32, #tpu.memory_space<vmem>>, vector<1x128xf32>
    %4 = vector.broadcast %3 : vector<1x128xf32> to vector<8x128xf32>
    %5 = arith.addf %2, %4 : vector<8x128xf32>
    %cst_5 = arith.constant 0.000000e+00 : f32
    %6 = vector.broadcast %cst_5 : f32 to vector<8x128xf32>
    %7 = arith.maximumf %5, %6 : vector<8x128xf32>
    %8 = arith.truncf %7 : vector<8x128xf32> to vector<8x128xbf16>
    %c0_6 = arith.constant 0 : index
    %c0_7 = arith.constant 0 : index
    %9 = vector.load %arg4[%c0_6, %c0_7] : memref<128x128xbf16, #tpu.memory_space<vmem>>, vector<128x128xbf16>
    %cst_8 = arith.constant dense<0.000000e+00> : vector<8x128xf32>
    %10 = tpu.matmul %8, %9, %cst_8 {dimension_numbers = #tpu.dot_dimension_numbers<[1], [0], [0], [1], [0, 0, 1, 1], [], []>} : vector<8x128xbf16>, vector<128x128xbf16>, vector<8x128xf32> -> vector<8x128xf32>
    %c0_9 = arith.constant 0 : index
    %c0_10 = arith.constant 0 : index
    %11 = vector.load %arg5[%c0_9, %c0_10] : memref<1x128xf32, #tpu.memory_space<vmem>>, vector<1x128xf32>
    %12 = vector.broadcast %11 : vector<1x128xf32> to vector<8x128xf32>
    %13 = arith.addf %10, %12 : vector<8x128xf32>
    %cst_11 = arith.constant 0.000000e+00 : f32
    %14 = vector.broadcast %cst_11 : f32 to vector<8x128xf32>
    %15 = arith.maximumf %13, %14 : vector<8x128xf32>
    %16 = arith.truncf %15 : vector<8x128xf32> to vector<8x128xbf16>
    %c0_12 = arith.constant 0 : index
    %c0_13 = arith.constant 0 : index
    %17 = vector.load %arg6[%c0_12, %c0_13] : memref<128x128xbf16, #tpu.memory_space<vmem>>, vector<128x128xbf16>
    %cst_14 = arith.constant dense<0.000000e+00> : vector<8x128xf32>
    %18 = tpu.matmul %16, %17, %cst_14 {dimension_numbers = #tpu.dot_dimension_numbers<[1], [0], [0], [1], [0, 0, 1, 1], [], []>} : vector<8x128xbf16>, vector<128x128xbf16>, vector<8x128xf32> -> vector<8x128xf32>
    %c0_15 = arith.constant 0 : index
    %c0_16 = arith.constant 0 : index
    %19 = vector.load %arg7[%c0_15, %c0_16] : memref<1x128xf32, #tpu.memory_space<vmem>>, vector<1x128xf32>
    %20 = vector.broadcast %19 : vector<1x128xf32> to vector<8x128xf32>
    %21 = arith.addf %18, %20 : vector<8x128xf32>
    %22 = arith.truncf %21 : vector<8x128xf32> to vector<8x128xbf16>
    %c0_17 = arith.constant 0 : index
    %c0_18 = arith.constant 0 : index
    %23 = vector.load %arg8[%c0_17, %c0_18] : memref<8x128xbf16, #tpu.memory_space<vmem>>, vector<8x128xbf16>
    tpu.vector_store %arg8[%c0_17, %c0_18], %22 {strides = array<i32>} : memref<8x128xbf16, #tpu.memory_space<vmem>>, vector<8x128xbf16>,
    return
  }
  func.func @transform_0(%arg0: i32) -> (i32, i32) {
    %c0_i32 = arith.constant 0 : i32
    %c0_i32_0 = arith.constant 0 : i32
    return %arg0, %c0_i32 : i32, i32
  }
  func.func @transform_1(%arg0: i32) -> (i32, i32) {
    %c0_i32 = arith.constant 0 : i32
    %c0_i32_0 = arith.constant 0 : i32
    %c0_i32_1 = arith.constant 0 : i32
    return %c0_i32, %c0_i32_0 : i32, i32
  }
  func.func @transform_2(%arg0: i32) -> (i32, i32) {
    %c0_i32 = arith.constant 0 : i32
    %c0_i32_0 = arith.constant 0 : i32
    %c0_i32_1 = arith.constant 0 : i32
    return %c0_i32, %c0_i32_0 : i32, i32
  }
  func.func @transform_3(%arg0: i32) -> (i32, i32) {
    %c0_i32 = arith.constant 0 : i32
    %c0_i32_0 = arith.constant 0 : i32
    %c0_i32_1 = arith.constant 0 : i32
    return %c0_i32, %c0_i32_0 : i32, i32
  }
  func.func @transform_4(%arg0: i32) -> (i32, i32) {
    %c0_i32 = arith.constant 0 : i32
    %c0_i32_0 = arith.constant 0 : i32
    %c0_i32_1 = arith.constant 0 : i32
    return %c0_i32, %c0_i32_0 : i32, i32
  }
  func.func @transform_5(%arg0: i32) -> (i32, i32) {
    %c0_i32 = arith.constant 0 : i32
    %c0_i32_0 = arith.constant 0 : i32
    %c0_i32_1 = arith.constant 0 : i32
    return %c0_i32, %c0_i32_0 : i32, i32
  }
  func.func @transform_6(%arg0: i32) -> (i32, i32) {
    %c0_i32 = arith.constant 0 : i32
    %c0_i32_0 = arith.constant 0 : i32
    %c0_i32_1 = arith.constant 0 : i32
    return %c0_i32, %c0_i32_0 : i32, i32
  }
  func.func @transform_7(%arg0: i32) -> (i32, i32) {
    %c0_i32 = arith.constant 0 : i32
    %c0_i32_0 = arith.constant 0 : i32
    return %arg0, %c0_i32 : i32, i32
  }
}

</mosaic_0001>

<bundles_post_ra>
// kernel: _mnist_forward.1
= control target key start
LH: loop header
LB: loop body
LE: loop exit
PB: predicated region body
PF: predicated region fallthrough
CT: control target
= control target key end

     0   :  { %12 = vsyncpa [#allocation3], 0  ;;  %s773_s0 = inlined_call_operand.vmem [shape: bf16[8,128], index: 0, kind: input, shape index: {}]   ;;  %s774_s1 = inlined_call_operand.hbm [shape: bf16[128,128], index: 1, kind: input, shape index: {}]   ;;  %s775_s2 = inlined_call_operand.vmem [shape: f32[1,128], index: 2, kind: input, shape index: {}]   ;;  %s776_s3 = inlined_call_operand.hbm [shape: bf16[128,128], index: 3, kind: input, shape index: {}]   ;;  %s777_s4 = inlined_call_operand.vmem [shape: f32[1,128], index: 4, kind: input, shape index: {}]   ;;  %s778_s5 = inlined_call_operand.hbm [shape: bf16[128,128], index: 5, kind: input, shape index: {}]   ;;  %s779_s6 = inlined_call_operand.vmem [shape: f32[1,128], index: 6, kind: input, shape index: {}]   ;;  %s780_s7 = inlined_call_operand.vmem [shape: bf16[8,128], index: 7, kind: output, shape index: {}]  }
   0x1   :  { %13 = vsyncpa [#allocation5], 0  ;;  %s629_s24 = smov [#allocation4]   ;;  %s630_s26 = smov [#allocation2]  }
   0x2   :  { %s35_s25 = sshll.u32 %s629_s24, 4  ;;  %s21_s27 = sshll.u32 %s630_s26, 4  ;;  %s36_s25 = int_to_ptr.vmem [resolvable:$true] %s35_s25  ;;  %s676_s27 = int_to_ptr.vmem [resolvable:$true] %s21_s27 }
   0x3   :  { %s559_s30 = scalar_lea.hbm %s776_s3, 1024 }
   0x4   :  { %p560_p0 = scmp.ne.s32.totalorder %s776_s3, %s559_s30  ;;  %p563_p1 = scmp.lt.u32.totalorder %s559_s30, %s776_s3 }
   0x6   :  { %p565_p2 = pnand %p563_p1, %p560_p0 }
   0x8   :  { %568 = shalt.err (!%p565_p2)
}
   0x9   :  { %s569_s12 = scalar_lea.vmem %s36_s25, 1024  ;;  %p574_p4 = scmp.lt.s32.totalorder %s36_s25, %s36_s25 }
   0xa   :  { %p570_p3 = scmp.ne.s32.totalorder %s36_s25, %s569_s12  ;;  %p575_p5 = scmp.lt.s32.totalorder %s569_s12, %s569_s12 }
   0xc   :  { %p576_p6 = por %p575_p5, %p574_p4 }
   0xe   :  { %p577_p7 = pnand %p576_p6, %p570_p3 }
  0x10   :  { %580 = shalt.err (!%p577_p7)
}
  0x11   :  { %s631_s13 = smov 64   ;;  %s632_s14 = smov 4  }
  0x12   :  { %41 = dma.hbm_to_vmem [thread:$0]  %s776_s3, 1024, %s36_s25, [#allocation5], %s631_s13, %s631_s13, %s632_s14  }
  0x13   :  { %s581_s19 = scalar_lea.hbm %s774_s1, 1024 }
  0x14   :  { %p582_p8 = scmp.ne.s32.totalorder %s774_s1, %s581_s19  ;;  %p585_p9 = scmp.lt.u32.totalorder %s581_s19, %s774_s1 }
  0x16   :  { %p587_p10 = pnand %p585_p9, %p582_p8 }
  0x18   :  { %590 = shalt.err (!%p587_p10)
}
  0x19   :  { %s591_s24 = scalar_lea.vmem %s676_s27, 1024  ;;  %p596_p12 = scmp.lt.s32.totalorder %s676_s27, %s676_s27 }
  0x1a   :  { %p592_p11 = scmp.ne.s32.totalorder %s676_s27, %s591_s24  ;;  %p597_p13 = scmp.lt.s32.totalorder %s591_s24, %s591_s24 }
  0x1c   :  { %p598_p0 = por %p597_p13, %p596_p12 }
  0x1e   :  { %p599_p1 = pnand %p598_p0, %p592_p11 }
  0x20   :  { %602 = shalt.err (!%p599_p1)
}
  0x21   :  { %27 = dma.hbm_to_vmem [thread:$0]  %s774_s1, 1024, %s676_s27, [#allocation3], %s631_s13, %s631_s13, %s632_s14  }
  0x22   :  { %s633_s26 = smov [#allocation6]   ;;  %s603_s8 = scalar_lea.hbm %s778_s5, 1024 }
  0x23   :  { %s49_s28 = sshll.u32 %s633_s26, 4  ;;  %p604_p2 = scmp.ne.s32.totalorder %s778_s5, %s603_s8  ;;  %s50_s28 = int_to_ptr.vmem [resolvable:$true] %s49_s28 }
  0x24   :  { %p607_p3 = scmp.lt.u32.totalorder %s603_s8, %s778_s5 }
  0x26   :  { %p609_p4 = pnand %p607_p3, %p604_p2 }
  0x28   :  { %612 = shalt.err (!%p609_p4)
}
  0x29   :  { %s613_s15 = scalar_lea.vmem %s50_s28, 1024  ;;  %p618_p6 = scmp.lt.s32.totalorder %s50_s28, %s50_s28 }
  0x2a   :  { %p614_p5 = scmp.ne.s32.totalorder %s50_s28, %s613_s15  ;;  %p619_p7 = scmp.lt.s32.totalorder %s613_s15, %s613_s15 }
  0x2c   :  { %p620_p8 = por %p619_p7, %p618_p6 }
  0x2e   :  { %p621_p9 = pnand %p620_p8, %p614_p5 }
  0x30   :  { %624 = shalt.err (!%p621_p9)
}
  0x31   :  { %55 = dma.hbm_to_vmem [thread:$0]  %s778_s5, 1024, %s50_s28, [#allocation5], %s631_s13, %s631_s13, %s632_s14  }
  0x32   :  { %625 = dma.done.wait [#allocation3], 1024  }
  0x33   :  { %626 = vsyncadd [#allocation3], 4294966272 }
  0x34   :  { %627 = dma.done.wait [#allocation5], 2048  }
  0x35   :  { %628 = vsyncadd [#allocation5], 4294965248  ;;  %v634_v0 = vmov 0.0   ;;  %vm635_vm0 = vmmov 0   ;;  %v535_v1 = vld [vmem:[#allocation2] sm:$0xff]   ;;  %v536_v2 = vld [vmem:[#allocation2 + $0x8] sm:$0xff]  }
  0x36   :  { %468 = vmatprep.subr.bf16.mxu0 %v634_v0  ;;  %484 = vmatprep.mubr.msk.bf16.mxu0 %vm635_vm0, %v634_v0  ;;  %v537_v3 = vld [vmem:[#allocation2 + $0x10] sm:$0xff]   ;;  %v543_v4 = vld [vmem:[#allocation4] sm:$0xff]   ;;  %v538_v5 = vld [vmem:[#allocation2 + $0x18] sm:$0xff]  }
  0x37   :  { %488 = vmatprep.subr.bf16.mxu1 %v634_v0  ;;  %504 = vmatprep.mubr.msk.bf16.mxu1 %vm635_vm0, %v634_v0  ;;  %v544_v6 = vld [vmem:[#allocation4 + $0x8] sm:$0xff]   ;;  %v539_v7 = vld [vmem:[#allocation2 + $0x20] sm:$0xff]   ;;  %v545_v8 = vld [vmem:[#allocation4 + $0x10] sm:$0xff]  }
  0x38   :  { %469 = vmatpush3.bf16.msra.mxu0 %v535_v1  ;;  %489 = vmatpush3.bf16.msra.mxu1 %v543_v4  ;;  %v540_v9 = vld [vmem:[#allocation2 + $0x28] sm:$0xff]   ;;  %v546_v10 = vld [vmem:[#allocation4 + $0x18] sm:$0xff]   ;;  %v541_v11 = vld [vmem:[#allocation2 + $0x30] sm:$0xff]  }
  0x39   :  { %470 = vmatprep.subr.bf16.mxu0 %v634_v0  ;;  %490 = vmatprep.subr.bf16.mxu1 %v634_v0  ;;  %v547_v12 = vld [vmem:[#allocation4 + $0x20] sm:$0xff]   ;;  %v542_v13 = vld [vmem:[#allocation2 + $0x38] sm:$0xff]   ;;  %v548_v14 = vld [vmem:[#allocation4 + $0x28] sm:$0xff]  }
  0x3a   :  { %v68_v15 = vld [vmem:[%s773_s0] sm:$0xf]  ;;  %v549_v16 = vld [vmem:[#allocation4 + $0x30] sm:$0xff]   ;;  %v550_v17 = vld [vmem:[#allocation4 + $0x38] sm:$0xff]  }
  0x3b   :  { %v551_v18 = vld [vmem:[#allocation6] sm:$0xff]   ;;  %v552_v19 = vld [vmem:[#allocation6 + $0x8] sm:$0xff]   ;;  %v553_v20 = vld [vmem:[#allocation6 + $0x10] sm:$0xff]  }
  0x3c   :  { %471 = vmatpush3.bf16.msra.mxu0 %v536_v2  ;;  %491 = vmatpush3.bf16.msra.mxu1 %v544_v6  ;;  %v554_v21 = vld [vmem:[#allocation6 + $0x18] sm:$0xff]   ;;  %v555_v22 = vld [vmem:[#allocation6 + $0x20] sm:$0xff]   ;;  %v556_v23 = vld [vmem:[#allocation6 + $0x28] sm:$0xff]  }
  0x3d   :  { %472 = vmatprep.subr.bf16.mxu0 %v634_v0  ;;  %492 = vmatprep.subr.bf16.mxu1 %v634_v0  ;;  %v414_v24 = vld [vmem:[%s775_s2] ss:$0 sm:$0xff]  ;;  %v557_v32 = vld [vmem:[#allocation6 + $0x30] sm:$0xff]   ;;  %v558_v33 = vld [vmem:[#allocation6 + $0x38] sm:$0xff]  }
  0x3e   :  { %v423_v34 = vld [vmem:[%s777_s4] ss:$0 sm:$0xff] }
  0x3f   :  { %v432_v42 = vld [vmem:[%s779_s6] ss:$0 sm:$0xff] }
  0x40   :  { %473 = vmatpush3.bf16.msra.mxu0 %v537_v3  ;;  %493 = vmatpush3.bf16.msra.mxu1 %v545_v8 }
  0x41   :  { %474 = vmatprep.subr.bf16.mxu0 %v634_v0  ;;  %494 = vmatprep.subr.bf16.mxu1 %v634_v0 }
  0x44   :  { %475 = vmatpush3.bf16.msra.mxu0 %v538_v5  ;;  %495 = vmatpush3.bf16.msra.mxu1 %v546_v10 }
  0x45   :  { %476 = vmatprep.subr.bf16.mxu0 %v634_v0  ;;  %496 = vmatprep.subr.bf16.mxu1 %v634_v0 }
  0x48   :  { %477 = vmatpush3.bf16.msra.mxu0 %v539_v7  ;;  %497 = vmatpush3.bf16.msra.mxu1 %v547_v12 }
  0x49   :  { %478 = vmatprep.subr.bf16.mxu0 %v634_v0  ;;  %498 = vmatprep.subr.bf16.mxu1 %v634_v0 }
  0x4c   :  { %479 = vmatpush3.bf16.msra.mxu0 %v540_v9  ;;  %499 = vmatpush3.bf16.msra.mxu1 %v548_v14 }
  0x4d   :  { %480 = vmatprep.subr.bf16.mxu0 %v634_v0  ;;  %500 = vmatprep.subr.bf16.mxu1 %v634_v0 }
  0x50   :  { %481 = vmatpush3.bf16.msra.mxu0 %v541_v11  ;;  %501 = vmatpush3.bf16.msra.mxu1 %v549_v16 }
  0x51   :  { %482 = vmatprep.subr.bf16.mxu0 %v634_v0  ;;  %502 = vmatprep.subr.bf16.mxu1 %v634_v0 }
  0x54   :  { %483 = vmatpush3.bf16.msra.mxu0 %v542_v13  ;;  %503 = vmatpush3.bf16.msra.mxu1 %v550_v17 }
  0x55   :  { %508 = vmatprep.subr.bf16.mxu0 %v634_v0 }
  0x57   :  { %485 = vmatmul.mubr.bf16.vlgmr.msra.gmra.mrb[0].mxu0 %v68_v15 }
  0x58   :  { %524 = vmatprep.mubr.msk.bf16.mxu0 %vm635_vm0, %v634_v0  ;;  %509 = vmatpush3.bf16.msra.mxu0 %v551_v18 }
  0x59   :  { %510 = vmatprep.subr.bf16.mxu0 %v634_v0 }
  0x5c   :  { %511 = vmatpush3.bf16.msra.mxu0 %v552_v19 }
  0x5d   :  { %512 = vmatprep.subr.bf16.mxu0 %v634_v0 }
  0x60   :  { %513 = vmatpush3.bf16.msra.mxu0 %v553_v20 }
  0x61   :  { %514 = vmatprep.subr.bf16.mxu0 %v634_v0 }
  0x64   :  { %515 = vmatpush3.bf16.msra.mxu0 %v554_v21 }
  0x65   :  { %516 = vmatprep.subr.bf16.mxu0 %v634_v0 }
  0x68   :  { %517 = vmatpush3.bf16.msra.mxu0 %v555_v22 }
  0x69   :  { %518 = vmatprep.subr.bf16.mxu0 %v634_v0 }
  0x6c   :  { %519 = vmatpush3.bf16.msra.mxu0 %v556_v23 }
  0x6d   :  { %520 = vmatprep.subr.bf16.mxu0 %v634_v0 }
  0x70   :  { %521 = vmatpush3.bf16.msra.mxu0 %v557_v32 }
  0x71   :  { %522 = vmatprep.subr.bf16.mxu0 %v634_v0 }
  0x74   :  { %523 = vmatpush3.bf16.msra.mxu0 %v558_v33 }
 0x12a   :  { %v174_v25 = vpop.f32.mrb[0].mxu0 }
 0x12b   :  { %v175_v26 = vadd.f32 %v414_v24, %v174_v25  ;;  %v486_v27 = vpop.f32.mrb[1].mxu0 }
 0x12c   :  { %v177_v28 = vpop.f32.mrb[2].mxu0 }
 0x12d   :  { %v180_v29 = vmax.f32 %v175_v26, 0.0  ;;  %v487_v30 = vpop.f32.mrb[3].mxu0 }
 0x12f   :  { %v181_v31 = vpack.c.bf16 %v180_v29, %v180_v29 }
 0x131   :  { %505 = vmatmul.mubr.bf16.vlgmr.msra.gmra.mrb[0].mxu1 %v181_v31 }
 0x204   :  { %v287_v35 = vpop.f32.mrb[0].mxu1 }
 0x205   :  { %v288_v36 = vadd.f32 %v423_v34, %v287_v35  ;;  %v506_v37 = vpop.f32.mrb[1].mxu1 }
 0x206   :  { %v290_v38 = vpop.f32.mrb[2].mxu1 }
 0x207   :  { %v293_v39 = vmax.f32 %v288_v36, 0.0  ;;  %v507_v40 = vpop.f32.mrb[3].mxu1 }
 0x209   :  { %v294_v41 = vpack.c.bf16 %v293_v39, %v293_v39 }
 0x20b   :  { %525 = vmatmul.mubr.bf16.vlgmr.msra.gmra.mrb[4].mxu0 %v294_v41 }
 0x2de   :  { %v400_v43 = vpop.f32.mrb[4].mxu0 }
 0x2df   :  { %v401_v44 = vadd.f32 %v432_v42, %v400_v43  ;;  %v526_v45 = vpop.f32.mrb[5].mxu0 }
 0x2e0   :  { %v403_v46 = vpop.f32.mrb[6].mxu0 }
 0x2e1   :  { %v406_v47 = vpack.c.bf16 %v401_v44, %v401_v44  ;;  %v527_v48 = vpop.f32.mrb[7].mxu0 }
 0x2e3   :  { %407 = vst [vmem:[%s780_s7] sm:$0xf] %v406_v47 }
 0x2e4   :  { %412 = vsyncpa [#allocation3], 1 }
 0x2e5   :  { %413 = vsyncpa [#allocation5], 1 }

</bundles_post_ra>
